<compile_context>
chip_gen: v6e
topology: v6e:2x2x1
jax: 0.10.0
libtpu: 0.0.40
codegen_flags: <defaults>
</compile_context>

<pallas_src>
import math
import jax
import jax.numpy as jnp
from jax.experimental import pallas as pl
from jax.experimental.pallas import tpu as pltpu


def qnet_kernel(x_ref,
                w1_ref, b1_ref,
                w2_ref, b2_ref,
                w3_ref, b3_ref,
                w4_ref, b4_ref,
                o_ref):
    """Fused 4-layer MLP forward on one (TB, state_size) batch tile.

    Weights are bf16 (VMEM-resident across the whole grid); accumulation is f32 on the MXU;
    bias add + ReLU run in f32 on the VPU (free filler under the small dots; also keeps v5e,
    which has no bf16 VALU, on its fast path).
    """
    x = x_ref[...].astype(jnp.bfloat16)
    h1 = jnp.maximum(
        jnp.dot(x, w1_ref[...], preferred_element_type=jnp.float32) + b1_ref[...], 0.0)
    h2 = jnp.maximum(
        jnp.dot(h1.astype(jnp.bfloat16), w2_ref[...],
                preferred_element_type=jnp.float32) + b2_ref[...], 0.0)
    h3 = jnp.maximum(
        jnp.dot(h2.astype(jnp.bfloat16), w3_ref[...],
                preferred_element_type=jnp.float32) + b3_ref[...], 0.0)
    # Narrow (action_size-lane) masked store: cheap — vst slot has plenty of headroom,
    # and it keeps HBM writeback bytes at 4*action_size per row instead of 512 B.
    o_ref[...] = (
        jnp.dot(h3.astype(jnp.bfloat16), w4_ref[...],
                preferred_element_type=jnp.float32) + b4_ref[...]
    )


def _round_up(x, m):
    return -(-x // m) * m


def qnetwork_forward(state, params, *, tb=2048):
    """state: (B, state_size) f32 (bf16 also accepted). params: w1..w4 (in,out), b1..b4 (1,out) f32.

    Returns (B, action_size) f32 Q-values.
    """
    B, S = state.shape
    action_size = params["w4"].shape[1]

    # Adaptive batch tile:
    #   * big tiles (up to tb, capped at 4096) to amortize per-grid-step overhead,
    #   * but >= 2 grid steps when B >= 16 so "parallel" can use both v7x TensorCores,
    #   * multiple of 8 sublanes; ragged tail handled by Pallas (no wrapper-side padding).
    tb = min(tb, 4096)
    if B >= 16:
        TB = min(tb, _round_up(-(-B // 2), 8))
    else:
        TB = _round_up(max(B, 1), 8)
    TB = max(TB, 8)
    grid = (-(-B // TB),)

    w1 = params["w1"].astype(jnp.bfloat16)
    w2 = params["w2"].astype(jnp.bfloat16)
    w3 = params["w3"].astype(jnp.bfloat16)
    w4 = params["w4"].astype(jnp.bfloat16)
    b1, b2, b3, b4 = params["b1"], params["b2"], params["b3"], params["b4"]

    def resident(arr):
        # Full-array block, constant block index -> DMA'd once, stays in VMEM for all steps.
        return pl.BlockSpec(arr.shape, lambda i: (0, 0))

    out = pl.pallas_call(
        qnet_kernel,
        out_shape=jax.ShapeDtypeStruct((B, action_size), jnp.float32),
        grid=grid,
        in_specs=[
            pl.BlockSpec((TB, S), lambda i: (i, 0)),       # state: tiled over batch
            resident(w1), resident(b1),
            resident(w2), resident(b2),
            resident(w3), resident(b3),
            resident(w4), resident(b4),
        ],
        out_specs=pl.BlockSpec((TB, action_size), lambda i: (i, 0)),
        compiler_params=pltpu.CompilerParams(
            dimension_semantics=("parallel",)),
    )(state, w1, b1, w2, b2, w3, b3, w4, b4)

    return out


def init_params(key, state_size, action_size):
    """Deterministic init mirroring nn.Linear's uniform(-1/sqrt(fan_in), 1/sqrt(fan_in))."""
    sizes = [(state_size, 32), (32, 64), (64, 128), (128, action_size)]
    params = {}
    keys = jax.random.split(key, 2 * len(sizes))
    for i, (fin, fout) in enumerate(sizes):
        bound = 1.0 / math.sqrt(fin)
        params[f"w{i+1}"] = jax.random.uniform(
            keys[2 * i], (fin, fout), jnp.float32, minval=-bound, maxval=bound)
        params[f"b{i+1}"] = jax.random.uniform(
            keys[2 * i + 1], (1, fout), jnp.float32, minval=-bound, maxval=bound)
    return params


def reference_forward(state, params):
    """Plain-JAX reference matched to the kernel's numerics (bf16 dot inputs, f32 acc)."""
    bf = jnp.bfloat16
    h = jnp.maximum(
        jnp.dot(state.astype(bf), params["w1"].astype(bf),
                preferred_element_type=jnp.float32) + params["b1"], 0.0)
    h = jnp.maximum(
        jnp.dot(h.astype(bf), params["w2"].astype(bf),
                preferred_element_type=jnp.float32) + params["b2"], 0.0)
    h = jnp.maximum(
        jnp.dot(h.astype(bf), params["w3"].astype(bf),
                preferred_element_type=jnp.float32) + params["b3"], 0.0)
    return jnp.dot(h.astype(bf), params["w4"].astype(bf),
                   preferred_element_type=jnp.float32) + params["b4"]


if __name__ == "__main__":
    state_size = 8
    action_size = 4

    key = jax.random.PRNGKey(0)
    k_params, k_state, k_state2, k_state3 = jax.random.split(key, 4)
    params = init_params(k_params, state_size, action_size)

    # Small shape from the module spec (batch=2) — exercises the ragged single tail tile.
    batch = 2
    state = jax.random.normal(k_state, (batch, state_size), jnp.float32)
    out = jax.block_until_ready(qnetwork_forward(state, params))
    ref = reference_forward(state, params)
    assert out.shape == (batch, action_size)
    assert jnp.allclose(out, ref, atol=1e-2, rtol=1e-2), "mismatch vs reference (B=2)"

    # Ragged batch with a small tile -> multi-step grid, pipelining + masked tail writeback.
    batch2 = 300
    state2 = jax.random.normal(k_state2, (batch2, state_size), jnp.float32)
    out2 = jax.block_until_ready(qnetwork_forward(state2, params, tb=128))
    ref2 = reference_forward(state2, params)
    assert out2.shape == (batch2, action_size)
    assert jnp.allclose(out2, ref2, atol=1e-2, rtol=1e-2), "mismatch vs reference (B=300)"

    # Default (adaptive) tiling path: B >= 16 -> at least 2 grid steps, big tiles.
    batch3 = 1000
    state3 = jax.random.normal(k_state3, (batch3, state_size), jnp.float32)
    out3 = jax.block_until_ready(qnetwork_forward(state3, params))
    ref3 = reference_forward(state3, params)
    assert out3.shape == (batch3, action_size)
    assert jnp.allclose(out3, ref3, atol=1e-2, rtol=1e-2), "mismatch vs reference (B=1000)"

    print("KERNEL_OK")
</pallas_src>

<mosaic_0001>
module attributes {stable_mosaic.version = 11 : i64} {
  func.func @qnet_kernel(%arg0: i32, %arg1: memref<8x8xf32, #tpu.memory_space<vmem>>, %arg2: memref<8x32xbf16, #tpu.memory_space<vmem>>, %arg3: memref<1x32xf32, #tpu.memory_space<vmem>>, %arg4: memref<32x64xbf16, #tpu.memory_space<vmem>>, %arg5: memref<1x64xf32, #tpu.memory_space<vmem>>, %arg6: memref<64x128xbf16, #tpu.memory_space<vmem>>, %arg7: memref<1x128xf32, #tpu.memory_space<vmem>>, %arg8: memref<128x4xbf16, #tpu.memory_space<vmem>>, %arg9: memref<1x4xf32, #tpu.memory_space<vmem>>, %arg10: memref<8x4xf32, #tpu.memory_space<vmem>>) attributes {dimension_semantics = [#tpu.dimension_semantics<parallel>], iteration_bounds = array<i64: 1>, scalar_prefetch = 0 : i64, scratch_operands = 0 : i64, tpu.core_type = #tpu.core_type<tc>, window_params = [{transform_indices = @transform_0, window_bounds = array<i64: 8, 8>}, {pipeline_mode = #tpu.pipeline_mode<synchronous>, transform_indices = @transform_1, window_bounds = array<i64: 8, 32>}, {pipeline_mode = #tpu.pipeline_mode<synchronous>, transform_indices = @transform_2, window_bounds = array<i64: 1, 32>}, {pipeline_mode = #tpu.pipeline_mode<synchronous>, transform_indices = @transform_3, window_bounds = array<i64: 32, 64>}, {pipeline_mode = #tpu.pipeline_mode<synchronous>, transform_indices = @transform_4, window_bounds = array<i64: 1, 64>}, {pipeline_mode = #tpu.pipeline_mode<synchronous>, transform_indices = @transform_5, window_bounds = array<i64: 64, 128>}, {pipeline_mode = #tpu.pipeline_mode<synchronous>, transform_indices = @transform_6, window_bounds = array<i64: 1, 128>}, {pipeline_mode = #tpu.pipeline_mode<synchronous>, transform_indices = @transform_7, window_bounds = array<i64: 128, 4>}, {pipeline_mode = #tpu.pipeline_mode<synchronous>, transform_indices = @transform_8, window_bounds = array<i64: 1, 4>}, {transform_indices = @transform_9, window_bounds = array<i64: 8, 4>}]} {
    %c0 = arith.constant 0 : index
    %c0_0 = arith.constant 0 : index
    %0 = vector.load %arg1[%c0, %c0_0] : memref<8x8xf32, #tpu.memory_space<vmem>>, vector<8x8xf32>
    %1 = arith.truncf %0 : vector<8x8xf32> to vector<8x8xbf16>
    %c0_1 = arith.constant 0 : index
    %c0_2 = arith.constant 0 : index
    %2 = vector.load %arg2[%c0_1, %c0_2] : memref<8x32xbf16, #tpu.memory_space<vmem>>, vector<8x32xbf16>
    %cst = arith.constant dense<0.000000e+00> : vector<8x32xf32>
    %3 = tpu.matmul %1, %2, %cst {dimension_numbers = #tpu.dot_dimension_numbers<[1], [0], [0], [1], [0, 0, 1, 1], [], []>} : vector<8x8xbf16>, vector<8x32xbf16>, vector<8x32xf32> -> vector<8x32xf32>
    %c0_3 = arith.constant 0 : index
    %c0_4 = arith.constant 0 : index
    %4 = vector.load %arg3[%c0_3, %c0_4] : memref<1x32xf32, #tpu.memory_space<vmem>>, vector<1x32xf32>
    %5 = vector.broadcast %4 : vector<1x32xf32> to vector<8x32xf32>
    %6 = arith.addf %3, %5 : vector<8x32xf32>
    %cst_5 = arith.constant 0.000000e+00 : f32
    %7 = vector.broadcast %cst_5 : f32 to vector<8x32xf32>
    %8 = arith.maximumf %6, %7 : vector<8x32xf32>
    %9 = arith.truncf %8 : vector<8x32xf32> to vector<8x32xbf16>
    %c0_6 = arith.constant 0 : index
    %c0_7 = arith.constant 0 : index
    %10 = vector.load %arg4[%c0_6, %c0_7] : memref<32x64xbf16, #tpu.memory_space<vmem>>, vector<32x64xbf16>
    %cst_8 = arith.constant dense<0.000000e+00> : vector<8x64xf32>
    %11 = tpu.matmul %9, %10, %cst_8 {dimension_numbers = #tpu.dot_dimension_numbers<[1], [0], [0], [1], [0, 0, 1, 1], [], []>} : vector<8x32xbf16>, vector<32x64xbf16>, vector<8x64xf32> -> vector<8x64xf32>
    %c0_9 = arith.constant 0 : index
    %c0_10 = arith.constant 0 : index
    %12 = vector.load %arg5[%c0_9, %c0_10] : memref<1x64xf32, #tpu.memory_space<vmem>>, vector<1x64xf32>
    %13 = vector.broadcast %12 : vector<1x64xf32> to vector<8x64xf32>
    %14 = arith.addf %11, %13 : vector<8x64xf32>
    %cst_11 = arith.constant 0.000000e+00 : f32
    %15 = vector.broadcast %cst_11 : f32 to vector<8x64xf32>
    %16 = arith.maximumf %14, %15 : vector<8x64xf32>
    %17 = arith.truncf %16 : vector<8x64xf32> to vector<8x64xbf16>
    %c0_12 = arith.constant 0 : index
    %c0_13 = arith.constant 0 : index
    %18 = vector.load %arg6[%c0_12, %c0_13] : memref<64x128xbf16, #tpu.memory_space<vmem>>, vector<64x128xbf16>
    %cst_14 = arith.constant dense<0.000000e+00> : vector<8x128xf32>
    %19 = tpu.matmul %17, %18, %cst_14 {dimension_numbers = #tpu.dot_dimension_numbers<[1], [0], [0], [1], [0, 0, 1, 1], [], []>} : vector<8x64xbf16>, vector<64x128xbf16>, vector<8x128xf32> -> vector<8x128xf32>
    %c0_15 = arith.constant 0 : index
    %c0_16 = arith.constant 0 : index
    %20 = vector.load %arg7[%c0_15, %c0_16] : memref<1x128xf32, #tpu.memory_space<vmem>>, vector<1x128xf32>
    %21 = vector.broadcast %20 : vector<1x128xf32> to vector<8x128xf32>
    %22 = arith.addf %19, %21 : vector<8x128xf32>
    %cst_17 = arith.constant 0.000000e+00 : f32
    %23 = vector.broadcast %cst_17 : f32 to vector<8x128xf32>
    %24 = arith.maximumf %22, %23 : vector<8x128xf32>
    %25 = arith.truncf %24 : vector<8x128xf32> to vector<8x128xbf16>
    %c0_18 = arith.constant 0 : index
    %c0_19 = arith.constant 0 : index
    %26 = vector.load %arg8[%c0_18, %c0_19] : memref<128x4xbf16, #tpu.memory_space<vmem>>, vector<128x4xbf16>
    %cst_20 = arith.constant dense<0.000000e+00> : vector<8x4xf32>
    %27 = tpu.matmul %25, %26, %cst_20 {dimension_numbers = #tpu.dot_dimension_numbers<[1], [0], [0], [1], [0, 0, 1, 1], [], []>} : vector<8x128xbf16>, vector<128x4xbf16>, vector<8x4xf32> -> vector<8x4xf32>
    %c0_21 = arith.constant 0 : index
    %c0_22 = arith.constant 0 : index
    %28 = vector.load %arg9[%c0_21, %c0_22] : memref<1x4xf32, #tpu.memory_space<vmem>>, vector<1x4xf32>
    %29 = vector.broadcast %28 : vector<1x4xf32> to vector<8x4xf32>
    %30 = arith.addf %27, %29 : vector<8x4xf32>
    %c0_23 = arith.constant 0 : index
    %c0_24 = arith.constant 0 : index
    %31 = vector.load %arg10[%c0_23, %c0_24] : memref<8x4xf32, #tpu.memory_space<vmem>>, vector<8x4xf32>
    tpu.vector_store %arg10[%c0_23, %c0_24], %30 {strides = array<i32>} : memref<8x4xf32, #tpu.memory_space<vmem>>, vector<8x4xf32>,
    return
  }
  func.func @transform_0(%arg0: i32) -> (i32, i32) {
    %c0_i32 = arith.constant 0 : i32
    %c0_i32_0 = arith.constant 0 : i32
    return %arg0, %c0_i32 : i32, i32
  }
  func.func @transform_1(%arg0: i32) -> (i32, i32) {
    %c0_i32 = arith.constant 0 : i32
    %c0_i32_0 = arith.constant 0 : i32
    %c0_i32_1 = arith.constant 0 : i32
    return %c0_i32, %c0_i32_0 : i32, i32
  }
  func.func @transform_2(%arg0: i32) -> (i32, i32) {
    %c0_i32 = arith.constant 0 : i32
    %c0_i32_0 = arith.constant 0 : i32
    %c0_i32_1 = arith.constant 0 : i32
    return %c0_i32, %c0_i32_0 : i32, i32
  }
  func.func @transform_3(%arg0: i32) -> (i32, i32) {
    %c0_i32 = arith.constant 0 : i32
    %c0_i32_0 = arith.constant 0 : i32
    %c0_i32_1 = arith.constant 0 : i32
    return %c0_i32, %c0_i32_0 : i32, i32
  }
  func.func @transform_4(%arg0: i32) -> (i32, i32) {
    %c0_i32 = arith.constant 0 : i32
    %c0_i32_0 = arith.constant 0 : i32
    %c0_i32_1 = arith.constant 0 : i32
    return %c0_i32, %c0_i32_0 : i32, i32
  }
  func.func @transform_5(%arg0: i32) -> (i32, i32) {
    %c0_i32 = arith.constant 0 : i32
    %c0_i32_0 = arith.constant 0 : i32
    %c0_i32_1 = arith.constant 0 : i32
    return %c0_i32, %c0_i32_0 : i32, i32
  }
  func.func @transform_6(%arg0: i32) -> (i32, i32) {
    %c0_i32 = arith.constant 0 : i32
    %c0_i32_0 = arith.constant 0 : i32
    %c0_i32_1 = arith.constant 0 : i32
    return %c0_i32, %c0_i32_0 : i32, i32
  }
  func.func @transform_7(%arg0: i32) -> (i32, i32) {
    %c0_i32 = arith.constant 0 : i32
    %c0_i32_0 = arith.constant 0 : i32
    %c0_i32_1 = arith.constant 0 : i32
    return %c0_i32, %c0_i32_0 : i32, i32
  }
  func.func @transform_8(%arg0: i32) -> (i32, i32) {
    %c0_i32 = arith.constant 0 : i32
    %c0_i32_0 = arith.constant 0 : i32
    %c0_i32_1 = arith.constant 0 : i32
    return %c0_i32, %c0_i32_0 : i32, i32
  }
  func.func @transform_9(%arg0: i32) -> (i32, i32) {
    %c0_i32 = arith.constant 0 : i32
    %c0_i32_0 = arith.constant 0 : i32
    return %arg0, %c0_i32 : i32, i32
  }
}

</mosaic_0001>

<bundles_post_ra>
// kernel: tpu_custom_call.1
= control target key start
LH: loop header
LB: loop body
LE: loop exit
PB: predicated region body
PF: predicated region fallthrough
CT: control target
= control target key end

     0   :  { %14 = vsyncpa [#allocation3], 0  ;;  %vm48_vm0 = vcmask 1043456   ;;  %v504_v1 = vmov 0.0   ;;  %vm505_vm1 = vmmov 0   ;;  %vm44_vm2 = vcmask 64512   ;;  %s645_s0 = inlined_call_operand.vmem [shape: f32[2,8], index: 0, kind: input, shape index: {}]   ;;  %s646_s1 = inlined_call_operand.vmem [shape: bf16[8,32], index: 1, kind: input, shape index: {}]   ;;  %s647_s2 = inlined_call_operand.vmem [shape: f32[1,32], index: 2, kind: input, shape index: {}]   ;;  %s648_s3 = inlined_call_operand.vmem [shape: bf16[32,64], index: 3, kind: input, shape index: {}]   ;;  %s649_s4 = inlined_call_operand.vmem [shape: f32[1,64], index: 4, kind: input, shape index: {}]   ;;  %s650_s5 = inlined_call_operand.vmem [shape: bf16[64,128], index: 5, kind: input, shape index: {}]   ;;  %s651_s6 = inlined_call_operand.vmem [shape: f32[1,128], index: 6, kind: input, shape index: {}]   ;;  %s652_s7 = inlined_call_operand.vmem [shape: bf16[128,4], index: 7, kind: input, shape index: {}]   ;;  %s653_s8 = inlined_call_operand.vmem [shape: f32[1,4], index: 8, kind: input, shape index: {}]   ;;  %s654_s9 = inlined_call_operand.hbm [shape: f32[2,4], index: 9, kind: output, shape index: {}]  }
   0x1   :  { %v36_v0 = vld [vmem:[%s646_s1] sm:$0xf]  ;;  %417 = vmatprep.subr.bf16.mxu0 %v504_v1  ;;  %443 = vmatprep.subr.bf16.mxu1 %v504_v1  ;;  %v468_v5 = vld [vmem:[%s648_s3 + $0x8] sm:$0xff]   ;;  %vm117_vm3 = vcmask 261120   ;;  %v470_v13 = vld [vmem:[%s650_s5 + $0x18] sm:$0xff]   ;;  %vm202_vm4 = vcmask 523264  }
   0x2   :  { %v50_v2 = vsel %vm48_vm0, %v36_v0, 0  ;;  %v34_v3 = vld [vmem:[%s645_s0] sm:$0xff]  ;;  %419 = vmatprep.mubr.msk.bf16.mxu0 %vm505_vm1, %v504_v1  ;;  %459 = vmatprep.mubr.msk.bf16.mxu1 %vm505_vm1, %v504_v1  ;;  %v471_v16 = vld [vmem:[%s650_s5 + $0x10] sm:$0xff]   ;;  %v472_v17 = vld [vmem:[%s650_s5 + $0x8] sm:$0xff]   ;;  %vm359_vm5 = vcmask 31744  }
   0x3   :  { %418 = vmatpush3.bf16.msra.mxu0 %v50_v2  ;;  %v35_v4 = vpack.c.bf16 %v34_v3, %v34_v3  ;;  %v469_v6 = vld [vmem:[%s648_s3] sm:$0xff]   ;;  %v474_v19 = vld [vmem:[%s652_s7 + $0x38] sm:$0xff]   ;;  %v475_v20 = vld [vmem:[%s652_s7 + $0x30] sm:$0xff]  }
   0x4   :  { %423 = vmatprep.subr.bf16.mxu0 %v504_v1  ;;  %v377_v7 = vld [vmem:[%s647_s2] ss:$0 sm:$0xff]  ;;  %444 = vmatpush3.bf16.msra.mxu1 %v474_v19  ;;  %v476_v21 = vld [vmem:[%s652_s7 + $0x28] sm:$0xff]   ;;  %v478_v23 = vld [vmem:[%s652_s7 + $0x18] sm:$0xff]  }
   0x5   :  { %v473_v18 = vld [vmem:[%s650_s5] sm:$0xff]   ;;  %445 = vmatprep.subr.bf16.mxu1 %v504_v1  ;;  %v479_v24 = vld [vmem:[%s652_s7 + $0x10] sm:$0xff]   ;;  %v480_v33 = vld [vmem:[%s652_s7 + $0x8] sm:$0xff]  }
   0x6   :  { %420 = vmatmul.mubr.msk.bf16.vlgmr.msra.gmra.mxu0 %vm44_vm2, %v35_v4  ;;  %v477_v22 = vld [vmem:[%s652_s7 + $0x20] sm:$0xff]  }
   0x7   :  { %424 = vmatpush3.bf16.msra.mxu0 %v468_v5  ;;  %427 = vmatprep.mubr.msk.bf16.mxu0 %vm505_vm1, %v504_v1  ;;  %v379_v25 = vld [vmem:[%s649_s4] ss:$0 sm:$0xff] }
   0x8   :  { %425 = vmatprep.subr.bf16.mxu0 %v504_v1  ;;  %446 = vmatpush3.bf16.msra.mxu1 %v475_v20  ;;  %v481_v34 = vld [vmem:[%s652_s7] sm:$0xff]  }
   0x9   :  { %447 = vmatprep.subr.bf16.mxu1 %v504_v1  ;;  %v383_v35 = vld [vmem:[%s651_s6] ss:$0 sm:$0xff] }
   0xa   :  { %v389_v43 = vld [vmem:[%s653_s8] ss:$0 sm:$0xff] }
   0xb   :  { %426 = vmatpush3.bf16.msra.mxu0 %v469_v6 }
   0xc   :  { %431 = vmatprep.subr.bf16.mxu0 %v504_v1  ;;  %448 = vmatpush3.bf16.msra.mxu1 %v476_v21 }
   0xd   :  { %449 = vmatprep.subr.bf16.mxu1 %v504_v1 }
  0x10   :  { %450 = vmatpush3.bf16.msra.mxu1 %v477_v22 }
  0x11   :  { %451 = vmatprep.subr.bf16.mxu1 %v504_v1 }
  0x14   :  { %452 = vmatpush3.bf16.msra.mxu1 %v478_v23 }
  0x15   :  { %453 = vmatprep.subr.bf16.mxu1 %v504_v1 }
  0x18   :  { %454 = vmatpush3.bf16.msra.mxu1 %v479_v24 }
  0x19   :  { %455 = vmatprep.subr.bf16.mxu1 %v504_v1 }
  0x1c   :  { %456 = vmatpush3.bf16.msra.mxu1 %v480_v33 }
  0x1d   :  { %457 = vmatprep.subr.bf16.mxu1 %v504_v1 }
  0x20   :  { %458 = vmatpush3.bf16.msra.mxu1 %v481_v34 }
  0xc6   :  { %v86_v8 = vpop.f32.mrf.mxu0 }
  0xc7   :  { %v87_v9 = vadd.f32 %v377_v7, %v86_v8 }
  0xc8   :  { %v421_v10 = vpop.f32.mrf.mxu0 }
  0xc9   :  { %v92_v11 = vmax.f32 %v87_v9, 0.0 }
  0xca   :  { %v89_v12 = vpop.f32.mrf.mxu0 }
  0xcb   :  { %v93_v14 = vpack.c.bf16 %v92_v11, %v92_v11 }
  0xcc   :  { %v422_v15 = vpop.f32.mrf.mxu0 }
  0xcd   :  { %428 = vmatmul.mubr.msk.bf16.vlgmr.msra.gmra.mxu0 %vm117_vm3, %v93_v14 }
  0xce   :  { %432 = vmatpush3.bf16.msra.mxu0 %v470_v13  ;;  %439 = vmatprep.mubr.msk.bf16.mxu0 %vm505_vm1, %v504_v1 }
  0xcf   :  { %433 = vmatprep.subr.bf16.mxu0 %v504_v1 }
  0xd2   :  { %434 = vmatpush3.bf16.msra.mxu0 %v471_v16 }
  0xd3   :  { %435 = vmatprep.subr.bf16.mxu0 %v504_v1 }
  0xd6   :  { %436 = vmatpush3.bf16.msra.mxu0 %v472_v17 }
  0xd7   :  { %437 = vmatprep.subr.bf16.mxu0 %v504_v1 }
  0xda   :  { %438 = vmatpush3.bf16.msra.mxu0 %v473_v18 }
 0x18d   :  { %v155_v26 = vpop.f32.mrf.mxu0 }
 0x18e   :  { %v156_v27 = vadd.f32 %v379_v25, %v155_v26 }
 0x18f   :  { %v429_v28 = vpop.f32.mrf.mxu0 }
 0x190   :  { %v161_v29 = vmax.f32 %v156_v27, 0.0 }
 0x191   :  { %v158_v30 = vpop.f32.mrf.mxu0 }
 0x192   :  { %v162_v31 = vpack.c.bf16 %v161_v29, %v161_v29 }
 0x193   :  { %v430_v32 = vpop.f32.mrf.mxu0 }
 0x194   :  { %440 = vmatmul.mubr.msk.bf16.vlgmr.msra.gmra.mxu0 %vm202_vm4, %v162_v31 }
 0x254   :  { %v240_v36 = vpop.f32.mrf.mxu0 }
 0x255   :  { %v241_v37 = vadd.f32 %v383_v35, %v240_v36 }
 0x256   :  { %v441_v38 = vpop.f32.mrf.mxu0 }
 0x257   :  { %v246_v39 = vmax.f32 %v241_v37, 0.0 }
 0x258   :  { %v243_v40 = vpop.f32.mrf.mxu0 }
 0x259   :  { %v247_v41 = vpack.c.bf16 %v246_v39, %v246_v39 }
 0x25a   :  { %v442_v42 = vpop.f32.mrf.mxu0 }
 0x25b   :  { %460 = vmatmul.mubr.bf16.vlgmr.msra.gmra.mxu1 %v247_v41 }
 0x31b   :  { %v353_v44 = vpop.f32.mrf.mxu1 }
 0x31c   :  { %v354_v45 = vadd.f32 %v389_v43, %v353_v44 }
 0x31d   :  { %v461_v46 = vpop.f32.mrf.mxu1 }
 0x31e   :  { %360 = vst.msk [vmem:[#allocation2] sm:$0xff] %vm359_vm5, %v354_v45 }
 0x31f   :  { %v356_v47 = vpop.f32.mrf.mxu1 }
 0x321   :  { %v462_v48 = vpop.f32.mrf.mxu1 }
 0x322   :  { %365 = vsyncadd [#allocation3], 96  ;;  %s506_s6 = smov [#allocation2]  }
 0x323   :  { %s366_s7 = sshll.u32 %s506_s6, 4  ;;  %s367_s7 = int_to_ptr.vmem [resolvable:$true] %s366_s7 }
 0x324   :  { %s482_s19 = scalar_lea.vmem %s367_s7, 32  ;;  %s486_s2 = scalar_lea.vmem %s367_s7, 128 }
 0x325   :  { %p483_p0 = scmp.ne.s32.totalorder %s367_s7, %s482_s19  ;;  %p487_p1 = scmp.lt.s32.totalorder %s367_s7, %s367_s7 }
 0x326   :  { %p488_p2 = scmp.lt.s32.totalorder %s486_s2, %s482_s19 }
 0x328   :  { %p489_p3 = por %p488_p2, %p487_p1 }
 0x32a   :  { %p490_p4 = pnand %p489_p3, %p483_p0 }
 0x32c   :  { %493 = shalt.err (!%p490_p4)
}
 0x32d   :  { %s507_s8 = smov 32   ;;  %s508_s20 = smov 2  }
 0x32e   :  { %372 = dma.vmem_to_hbm [thread:$0]  %s367_s7, 32, %s654_s9, [#allocation3], %s507_s8, %s507_s8, %s508_s20  }
 0x32f   :  { %502 = dma.done.wait [#allocation3], 128  }
 0x330   :  { %503 = vsyncadd [#allocation3], 4294967168 }
 0x331   :  { %376 = vsyncpa [#allocation3], 1 }

</bundles_post_ra>
